<compile_context>
chip_gen: v5e
topology: v5e:2x2
jax: 0.10.0
libtpu: 0.0.40
codegen_flags: <defaults>
</compile_context>

<pallas_src>
import jax
import jax.numpy as jnp
from jax.experimental import pallas as pl
from jax.experimental.pallas import tpu as pltpu

OUT_DIM = 17  # 4 (hour one-hot) + 1 (day / 31) + 12 (month one-hot)


def one_hot_encode_vars_kernel(x_ref, o_ref):
    # torch `.to(torch.int64)` truncates; int32 is the native TPU int width.
    x = x_ref[...].astype(jnp.int32)            # (TILE_M, 3)
    hours = x[:, 0:1]                           # (TILE_M, 1)
    days = x[:, 1:2]                            # (TILE_M, 1)
    months = x[:, 2:3]                          # (TILE_M, 1)

    tm = x.shape[0]
    col = jax.lax.broadcasted_iota(jnp.int32, (tm, OUT_DIM), 1)

    # one_hot(hours // 6, 4) at columns 0..3, without integer division:
    #   column j hot  <=>  6*j <= hours < 6*(j+1)   (and j < 4)
    c6 = col * 6
    hour_oh = jnp.logical_and(
        jnp.logical_and(c6 <= hours, hours < c6 + 6), col < 4
    ).astype(jnp.float32)

    # one_hot(months - 1, 12) at columns 5..16:  j - 5 == months - 1
    # NOTE: out-of-range months/hours silently give all-zero rows (torch's
    # one_hot would raise); acceptable for valid calendar inputs.
    month_oh = (col == months + 4).astype(jnp.float32)

    # days / 31 (true division) at column 4
    day_col = (col == 4).astype(jnp.float32)
    days_scaled = days.astype(jnp.float32) / jnp.float32(31.0)   # (TILE_M, 1)

    # Disjoint masked terms: one iota, no nested selects.
    o_ref[...] = hour_oh + days_scaled * day_col + month_oh


def one_hot_encode_vars(exog_data, *, tile_m=4096):
    """exog_data: (B, T, 3) integer-valued array -> (B, T, 17) float32."""
    b, t, c = exog_data.shape
    assert c == 3, "exog_data must carry 3 exogenous features (hour, day, month)"
    m = b * t

    if exog_data.dtype not in (jnp.int32, jnp.float32):
        # TODO(synk): non-32-bit inputs (e.g. int64 with x64 enabled) still pay a
        # standalone cast pass; keep exog int32 at the producer to avoid it.
        exog_data = exog_data.astype(jnp.int32)
    x2d = exog_data.reshape(m, 3)               # layout-preserving (free) reshape

    if m <= tile_m:
        tile = m                                # single block == full extent
    else:
        tile = max(8, (tile_m // 8) * 8)        # sublane (8) alignment
    grid = (pl.cdiv(m, tile),)                  # boundary blocks handled by Pallas

    out = pl.pallas_call(
        one_hot_encode_vars_kernel,
        out_shape=jax.ShapeDtypeStruct((m, OUT_DIM), jnp.float32),
        grid=grid,
        in_specs=[pl.BlockSpec((tile, 3), lambda i: (i, 0))],
        out_specs=pl.BlockSpec((tile, OUT_DIM), lambda i: (i, 0)),
        compiler_params=pltpu.CompilerParams(
            dimension_semantics=("parallel",),   # shard rows across v7x's 2 TCs
            vmem_limit_bytes=32 * 1024 * 1024,
        ),
    )(x2d)
    return out.reshape(b, t, OUT_DIM)


def _reference(exog_data):
    e = exog_data.astype(jnp.int32)
    hours, days, months = e[..., 0], e[..., 1], e[..., 2]
    return jnp.concatenate(
        [
            jax.nn.one_hot(hours // 6, 4, dtype=jnp.float32),
            (days.astype(jnp.float32) / 31.0)[..., None],
            jax.nn.one_hot(months - 1, 12, dtype=jnp.float32),
        ],
        axis=-1,
    )


def _make_exog(key, b, t):
    kh, kd, km = jax.random.split(key, 3)
    hours = jax.random.randint(kh, (b, t), 0, 24)    # 0..23
    days = jax.random.randint(kd, (b, t), 1, 32)     # 1..31
    months = jax.random.randint(km, (b, t), 1, 13)   # 1..12
    return jnp.stack([hours, days, months], axis=-1).astype(jnp.int32)


if __name__ == "__main__":
    key = jax.random.PRNGKey(0)

    # 1) default tile (small demo shape -> single block)
    exog = _make_exog(key, 2, 64)                    # M = 128 rows
    out = jax.block_until_ready(one_hot_encode_vars(exog))
    ref = _reference(exog)
    assert out.shape == (2, 64, 17)
    assert bool(jnp.all(jnp.isfinite(out)))
    assert bool(jnp.allclose(out, ref, atol=1e-6, rtol=1e-6))

    # 2) forced multi-tile grid (2 blocks of 64 rows)
    out2 = jax.block_until_ready(one_hot_encode_vars(exog, tile_m=64))
    assert bool(jnp.allclose(out2, ref, atol=1e-6, rtol=1e-6))

    # 3) non-divisible boundary tile: 144 rows, 64-row tiles -> 3 blocks (last=16)
    exog3 = _make_exog(jax.random.PRNGKey(1), 2, 72)
    out3 = jax.block_until_ready(one_hot_encode_vars(exog3, tile_m=64))
    assert bool(jnp.allclose(out3, _reference(exog3), atol=1e-6, rtol=1e-6))

    print("KERNEL_OK")
</pallas_src>

<mosaic_0001>
module attributes {stable_mosaic.version = 11 : i64} {
  func.func @one_hot_encode_vars_kernel(%arg0: i32, %arg1: memref<128x3xi32, #tpu.memory_space<vmem>>, %arg2: memref<128x17xf32, #tpu.memory_space<vmem>>) attributes {dimension_semantics = [#tpu.dimension_semantics<parallel>], iteration_bounds = array<i64: 1>, scalar_prefetch = 0 : i64, scratch_operands = 0 : i64, tpu.core_type = #tpu.core_type<tc>, window_params = [{transform_indices = @transform_0, window_bounds = array<i64: 128, 3>}, {transform_indices = @transform_1, window_bounds = array<i64: 128, 17>}]} {
    %c0 = arith.constant 0 : index
    %c0_0 = arith.constant 0 : index
    %0 = vector.load %arg1[%c0, %c0_0] : memref<128x3xi32, #tpu.memory_space<vmem>>, vector<128x3xi32>
    %1 = vector.extract_strided_slice %0 {offsets = [0, 0], sizes = [128, 1], strides = [1, 1]} : vector<128x3xi32> to vector<128x1xi32>
    %2 = vector.extract_strided_slice %0 {offsets = [0, 1], sizes = [128, 1], strides = [1, 1]} : vector<128x3xi32> to vector<128x1xi32>
    %3 = vector.extract_strided_slice %0 {offsets = [0, 2], sizes = [128, 1], strides = [1, 1]} : vector<128x3xi32> to vector<128x1xi32>
    %4 = tpu.iota {dimensions = array<i32: 1>} : vector<128x17xi32>
    %c6_i32 = arith.constant 6 : i32
    %5 = vector.broadcast %c6_i32 : i32 to vector<128x17xi32>
    %6 = arith.muli %4, %5 : vector<128x17xi32>
    %7 = vector.broadcast %1 : vector<128x1xi32> to vector<128x17xi32>
    %8 = arith.cmpi sle, %6, %7 : vector<128x17xi32>
    %c6_i32_1 = arith.constant 6 : i32
    %9 = vector.broadcast %c6_i32_1 : i32 to vector<128x17xi32>
    %10 = arith.addi %6, %9 : vector<128x17xi32>
    %11 = vector.broadcast %1 : vector<128x1xi32> to vector<128x17xi32>
    %12 = arith.cmpi slt, %11, %10 : vector<128x17xi32>
    %13 = arith.andi %8, %12 : vector<128x17xi1>
    %c4_i32 = arith.constant 4 : i32
    %14 = vector.broadcast %c4_i32 : i32 to vector<128x17xi32>
    %15 = arith.cmpi slt, %4, %14 : vector<128x17xi32>
    %16 = arith.andi %13, %15 : vector<128x17xi1>
    %17 = arith.extui %16 : vector<128x17xi1> to vector<128x17xi32>
    %18 = arith.sitofp %17 : vector<128x17xi32> to vector<128x17xf32>
    %c4_i32_2 = arith.constant 4 : i32
    %19 = vector.broadcast %c4_i32_2 : i32 to vector<128x1xi32>
    %20 = arith.addi %3, %19 : vector<128x1xi32>
    %21 = vector.broadcast %20 : vector<128x1xi32> to vector<128x17xi32>
    %22 = arith.cmpi eq, %4, %21 : vector<128x17xi32>
    %23 = arith.extui %22 : vector<128x17xi1> to vector<128x17xi32>
    %24 = arith.sitofp %23 : vector<128x17xi32> to vector<128x17xf32>
    %c4_i32_3 = arith.constant 4 : i32
    %25 = vector.broadcast %c4_i32_3 : i32 to vector<128x17xi32>
    %26 = arith.cmpi eq, %4, %25 : vector<128x17xi32>
    %27 = arith.extui %26 : vector<128x17xi1> to vector<128x17xi32>
    %28 = arith.sitofp %27 : vector<128x17xi32> to vector<128x17xf32>
    %29 = arith.sitofp %2 : vector<128x1xi32> to vector<128x1xf32>
    %cst = arith.constant 3.100000e+01 : f32
    %30 = vector.broadcast %cst : f32 to vector<128x1xf32>
    %31 = arith.divf %29, %30 : vector<128x1xf32>
    %32 = vector.broadcast %31 : vector<128x1xf32> to vector<128x17xf32>
    %33 = arith.mulf %32, %28 : vector<128x17xf32>
    %34 = arith.addf %18, %33 : vector<128x17xf32>
    %35 = arith.addf %34, %24 : vector<128x17xf32>
    %c0_4 = arith.constant 0 : index
    %c0_5 = arith.constant 0 : index
    %36 = vector.load %arg2[%c0_4, %c0_5] : memref<128x17xf32, #tpu.memory_space<vmem>>, vector<128x17xf32>
    tpu.vector_store %arg2[%c0_4, %c0_5], %35 {strides = array<i32>} : memref<128x17xf32, #tpu.memory_space<vmem>>, vector<128x17xf32>,
    return
  }
  func.func @transform_0(%arg0: i32) -> (i32, i32) {
    %c0_i32 = arith.constant 0 : i32
    %c0_i32_0 = arith.constant 0 : i32
    return %arg0, %c0_i32 : i32, i32
  }
  func.func @transform_1(%arg0: i32) -> (i32, i32) {
    %c0_i32 = arith.constant 0 : i32
    %c0_i32_0 = arith.constant 0 : i32
    return %arg0, %c0_i32 : i32, i32
  }
}

</mosaic_0001>

<bundles_post_ra>
// kernel: tpu_custom_call.1
= control target key start
LH: loop header
LB: loop body
LE: loop exit
PB: predicated region body
PF: predicated region fallthrough
CT: control target
= control target key end

     0   :  { %v525_v0 = vmov 0   ;;  %v526_v19 = vmov 2   ;;  %v527_v23 = vmov 31.0   ;;  %v528_v43 = vmov 1   ;;  %s1052_s0 = inlined_call_operand.vmem [shape: s32[128,3], index: 0, kind: input, shape index: {}]   ;;  %s1053_s1 = inlined_call_operand.vmem [shape: f32[128,17], index: 1, kind: output, shape index: {}]  }
   0x1   :  { %516 = vset.pattern.permute.xlu2 %v525_v0  ;;  %515 = vset.pattern.permute.xlu1 %v525_v0  ;;  %v543_v1 = vld [vmem:[%s1052_s0 + $0x20] sm:$0xff]  ;;  %v548_v2 = vld [vmem:[%s1052_s0 + $0x10] sm:$0xff]  ;;  %v561_v4 = vld [vmem:[%s1052_s0 + $0x28] sm:$0xff]  ;;  %523 = vrcp.f32 %v527_v23  ;;  %vm455_vm11 = vcmask 138240  }
   0x2   :  { %v553_v3 = vld [vmem:[%s1052_s0] sm:$0xff]  ;;  %514 = vset.pattern.permute.xlu0 %v525_v0  ;;  %40 = vperm.xlu2 %516, %v543_v1   ;;  %v566_v5 = vld [vmem:[%s1052_s0 + $0x18] sm:$0xff]  ;;  %v571_v6 = vld [vmem:[%s1052_s0 + $0x8] sm:$0xff]  ;;  %v177_v20 = vadd.s32 4, %v543_v1  ;;  %v175_v21 = vadd.s32 4, %v548_v2  ;;  %v178_v26 = vadd.s32 4, %v561_v4  ;;  %v290_v44 = vcvt.s32.f32 %v548_v2 }
   0x3   :  { %34 = vperm.xlu1 %515, %v548_v2   ;;  %28 = vperm.xlu0 %514, %v553_v3   ;;  %v579_v7 = vld [vmem:[%s1052_s0 + $0x40] sm:$0xff]  ;;  %v584_v8 = vld [vmem:[%s1052_s0 + $0x38] sm:$0xff]  ;;  %v589_v9 = vld [vmem:[%s1052_s0 + $0x30] sm:$0xff]  ;;  %v174_v17 = vadd.s32 4, %v571_v6  ;;  %v173_v18 = vadd.s32 4, %v553_v3  ;;  %v176_v22 = vadd.s32 4, %v566_v5  ;;  %v288_v38 = vcvt.s32.f32 %v553_v3 }
   0x4   :  { %v597_v10 = vld [vmem:[%s1052_s0 + $0x58] sm:$0xff]  ;;  %v602_v11 = vld [vmem:[%s1052_s0 + $0x50] sm:$0xff]  ;;  %v607_v12 = vld [vmem:[%s1052_s0 + $0x48] sm:$0xff]  ;;  %v179_v24 = vadd.s32 4, %v589_v9  ;;  %v180_v25 = vadd.s32 4, %v584_v8  ;;  %v181_v31 = vadd.s32 4, %v579_v7  ;;  %v293_v45 = vcvt.s32.f32 %v561_v4 }
   0x5   :  { %v615_v13 = vld [vmem:[%s1052_s0 + $0x70] sm:$0xff]  ;;  %v620_v14 = vld [vmem:[%s1052_s0 + $0x68] sm:$0xff]  ;;  %v625_v15 = vld [vmem:[%s1052_s0 + $0x60] sm:$0xff]  ;;  %v182_v29 = vadd.s32 4, %v607_v12  ;;  %v183_v30 = vadd.s32 4, %v602_v11  ;;  %v184_v36 = vadd.s32 4, %v597_v10  ;;  %v289_v46 = vcvt.s32.f32 %v571_v6 }
   0x6   :  { %v633_v16 = vld [vmem:[%s1052_s0 + $0x78] sm:$0xff]  ;;  %v185_v34 = vadd.s32 4, %v625_v15  ;;  %v186_v35 = vadd.s32 4, %v620_v14  ;;  %v187_v41 = vadd.s32 4, %v615_v13  ;;  %v292_v51 = vcvt.s32.f32 %v543_v1 }
   0x7   :  { %v524_v27 = vpop.eup %523  ;;  %v188_v40 = vadd.s32 4, %v633_v16  ;;  %v291_v52 = vcvt.s32.f32 %v566_v5  ;;  %v296_v53 = vcvt.s32.f32 %v579_v7  ;;  %v295_v58 = vcvt.s32.f32 %v584_v8 }
   0x8   :  { %v305_v28 = vmul.f32 31.0, %v524_v27  ;;  %vm309_vm0 = vweird.f32 %v524_v27  ;;  %v294_v59 = vcvt.s32.f32 %v589_v9  ;;  %v299_v60 = vcvt.s32.f32 %v597_v10 }
   0x9   :  { %v298_v1 = vcvt.s32.f32 %v602_v11  ;;  %v302_v2 = vcvt.s32.f32 %v615_v13  ;;  %v297_v3 = vcvt.s32.f32 %v607_v12 }
   0xa   :  { %43 = vperm.xlu2 %516, %v561_v4   ;;  %v306_v32 = vsub.f32 1.0, %v305_v28 }
   0xb   :  { %37 = vperm.xlu1 %515, %v566_v5   ;;  %31 = vperm.xlu0 %514, %v571_v6  }
   0xc   :  { %v307_v33 = vmul.f32 %v524_v27, %v306_v32 }
   0xe   :  { %v308_v37 = vadd.f32 %v524_v27, %v307_v33 }
  0x10   :  { %v651_v39 = vsel %vm309_vm0, %v524_v27, %v308_v37 }
  0x11   :  { %v311_v42 = vmul.f32 %v651_v39, %v288_v38  ;;  %v313_v47 = vmul.f32 %v651_v39, %v290_v44  ;;  %v316_v48 = vmul.f32 %v651_v39, %v293_v45  ;;  %v312_v49 = vmul.f32 %v651_v39, %v289_v46 }
  0x12   :  { %52 = vperm.xlu2 %516, %v579_v7   ;;  %v315_v54 = vmul.f32 %v651_v39, %v292_v51  ;;  %v319_v55 = vmul.f32 %v651_v39, %v296_v53  ;;  %v314_v56 = vmul.f32 %v651_v39, %v291_v52  ;;  %v318_v61 = vmul.f32 %v651_v39, %v295_v58 }
  0x13   :  { %49 = vperm.xlu1 %515, %v584_v8   ;;  %46 = vperm.xlu0 %514, %v589_v9   ;;  %v322_v62 = vmul.f32 %v651_v39, %v299_v60  ;;  %v317_v63 = vmul.f32 %v651_v39, %v294_v59  ;;  %v321_v4 = vmul.f32 %v651_v39, %v298_v1  ;;  %v301_v8 = vcvt.s32.f32 %v620_v14 }
  0x14   :  { %v325_v5 = vmul.f32 %v651_v39, %v302_v2  ;;  %v320_v6 = vmul.f32 %v651_v39, %v297_v3 }
  0x1a   :  { %61 = vperm.xlu2 %516, %v597_v10  }
  0x1b   :  { %58 = vperm.xlu1 %515, %v602_v11   ;;  %55 = vperm.xlu0 %514, %v607_v12   ;;  %v300_v11 = vcvt.s32.f32 %v625_v15  ;;  %v324_v12 = vmul.f32 %v651_v39, %v301_v8 }
  0x22   :  { %70 = vperm.xlu2 %516, %v615_v13   ;;  %v323_v13 = vmul.f32 %v651_v39, %v300_v11 }
  0x23   :  { %67 = vperm.xlu1 %515, %v620_v14   ;;  %64 = vperm.xlu0 %514, %v625_v15   ;;  %v303_v14 = vcvt.s32.f32 %v633_v16 }
  0x2a   :  { %518 = vset.pattern.permute.xlu2 %v526_v19 }
  0x2b   :  { %517 = vset.pattern.permute.xlu1 %v526_v19  ;;  %73 = vperm.xlu0 %514, %v633_v16  }
  0x2c   :  { %193 = vperm.xlu2 %518, %v174_v17   ;;  %190 = vperm.xlu1 %517, %v173_v18  }
  0x33   :  { %519 = vset.pattern.permute.xlu0 %v526_v19 }
  0x34   :  { %202 = vperm.xlu2 %518, %v177_v20   ;;  %196 = vperm.xlu0 %519, %v175_v21   ;;  %v326_v20 = vmul.f32 %v651_v39, %v303_v14 }
  0x35   :  { %199 = vperm.xlu1 %517, %v176_v22  }
  0x3c   :  { %208 = vperm.xlu2 %518, %v179_v24   ;;  %211 = vperm.xlu0 %519, %v180_v25  }
  0x3d   :  { %205 = vperm.xlu1 %517, %v178_v26  }
  0x44   :  { %217 = vperm.xlu2 %518, %v182_v29   ;;  %220 = vperm.xlu0 %519, %v183_v30  }
  0x45   :  { %214 = vperm.xlu1 %517, %v181_v31   ;;  %v24_v31 = vlaneseq }
  0x47   :  { %v722_v32 = vand.u32 127, %v24_v31 }
  0x49   :  { %vm285_vm3 = vcmp.eq.s32.totalorder %v722_v32, 4  ;;  %vm124_vm4 = vcmp.lt.s32.totalorder %v722_v32, 4 }
  0x4c   :  { %226 = vperm.xlu2 %518, %v185_v34   ;;  %229 = vperm.xlu0 %519, %v186_v35  }
  0x4d   :  { %223 = vperm.xlu1 %517, %v184_v36   ;;  %v729_v36 = vmul.u32 6, %v722_v32 }
  0x4f   :  { %v732_v37 = vadd.s32 6, %v729_v36 }
  0x54   :  { %235 = vperm.xlu2 %518, %v188_v40   ;;  %520 = vset.pattern.permute.xlu0 %v528_v43 }
  0x55   :  { %232 = vperm.xlu1 %517, %v187_v41   ;;  %329 = vperm.xlu0 %520, %v311_v42   ;;  %v529_v41 = vmov 0.0  }
  0x56   :  { %v745_v42 = vsel %vm285_vm3, 1.0, %v529_v41 }
  0x5c   :  { %522 = vset.pattern.permute.xlu2 %v528_v43  ;;  %v662_v50 = vpop.permute.xlu2 %40 }
  0x5d   :  { %521 = vset.pattern.permute.xlu1 %v528_v43  ;;  %339 = vperm.xlu2 %522, %v313_v47   ;;  %vm79_vm7 = vcmp.le.s32.totalorder %v729_v36, %v662_v50  ;;  %vm96_vm8 = vcmp.lt.s32.totalorder %v662_v50, %v732_v37 }
  0x5e   :  { %354 = vperm.xlu0 %520, %v316_v48   ;;  %334 = vperm.xlu1 %521, %v312_v49   ;;  %vm112_vm10 = vmand %vm79_vm7, %vm96_vm8 }
  0x5f   :  { %vm129_vm12 = vmand %vm112_vm10, %vm124_vm4 }
  0x64   :  { %v670_v57 = vpop.permute.xlu2 %43 }
  0x65   :  { %349 = vperm.xlu2 %522, %v315_v54   ;;  %vm97_vm7 = vcmp.lt.s32.totalorder %v670_v57, %v732_v37 }
  0x66   :  { %369 = vperm.xlu0 %520, %v319_v55   ;;  %344 = vperm.xlu1 %521, %v314_v56   ;;  %v480_v55 = vsel %vm129_vm12, 1.0, %v529_v41 }
  0x6c   :  { %v678_v0 = vpop.permute.xlu2 %52 }
  0x6d   :  { %364 = vperm.xlu2 %522, %v318_v61  }
  0x6e   :  { %384 = vperm.xlu0 %520, %v322_v62   ;;  %359 = vperm.xlu1 %521, %v317_v63  }
  0x74   :  { %v686_v7 = vpop.permute.xlu2 %61 }
  0x75   :  { %v35_v9 = vpop.permute.xlu1 %34  ;;  %379 = vperm.xlu2 %522, %v321_v4   ;;  %v689_v10 = vpop.permute.xlu0 %28 }
  0x76   :  { %399 = vperm.xlu0 %520, %v325_v5   ;;  %374 = vperm.xlu1 %521, %v320_v6   ;;  %vm77_vm1 = vcmp.le.s32.totalorder %v729_v36, %v35_v9  ;;  %vm94_vm2 = vcmp.lt.s32.totalorder %v35_v9, %v732_v37  ;;  %vm75_vm0 = vcmp.le.s32.totalorder %v729_v36, %v689_v10 }
  0x77   :  { %vm110_vm5 = vmand %vm77_vm1, %vm94_vm2  ;;  %vm92_vm1 = vcmp.lt.s32.totalorder %v689_v10, %v732_v37 }
  0x78   :  { %vm127_vm6 = vmand %vm110_vm5, %vm124_vm4 }
  0x79   :  { %v478_v47 = vsel %vm127_vm6, 1.0, %v529_v41  ;;  %vm108_vm3 = vmand %vm75_vm0, %vm92_vm1  ;;  %vm80_vm6 = vcmp.le.s32.totalorder %v729_v36, %v670_v57 }
  0x7a   :  { %vm125_vm8 = vmand %vm108_vm3, %vm124_vm4 }
  0x7b   :  { %vm113_vm0 = vmand %vm80_vm6, %vm97_vm7  ;;  %v476_v4 = vsel %vm125_vm8, 1.0, %v529_v41  ;;  %vm100_vm7 = vcmp.lt.s32.totalorder %v678_v0, %v732_v37 }
  0x7c   :  { %v694_v17 = vpop.permute.xlu2 %70  ;;  %vm821_vm3 = vmand %vm113_vm0, %vm124_vm4 }
  0x7d   :  { %v696_v18 = vpop.permute.xlu1 %37  ;;  %394 = vperm.xlu2 %522, %v324_v12   ;;  %v698_v19 = vpop.permute.xlu0 %31 }
  0x7e   :  { %389 = vperm.xlu1 %521, %v323_v13   ;;  %vm78_vm8 = vcmp.le.s32.totalorder %v729_v36, %v696_v18 }
  0x85   :  { %v50_v21 = vpop.permute.xlu1 %49  ;;  %v702_v22 = vpop.permute.xlu0 %46 }
  0x86   :  { %v704_v15 = vpop.permute.xlu2 %193  ;;  %404 = vperm.xlu1 %521, %v326_v20   ;;  %vm82_vm13 = vcmp.le.s32.totalorder %v729_v36, %v50_v21  ;;  %vm99_vm14 = vcmp.lt.s32.totalorder %v50_v21, %v732_v37 }
  0x87   :  { %vm115_vm2 = vmand %vm82_vm13, %vm99_vm14  ;;  %vm93_vm14 = vcmp.lt.s32.totalorder %v698_v19, %v732_v37 }
  0x88   :  { %vm132_vm5 = vmand %vm115_vm2, %vm124_vm4 }
  0x89   :  { %v483_v1 = vsel %vm132_vm5, 1.0, %v529_v41  ;;  %vm83_vm5 = vcmp.le.s32.totalorder %v729_v36, %v678_v0 }
  0x8d   :  { %v706_v23 = vpop.permute.xlu1 %58  ;;  %v708_v24 = vpop.permute.xlu0 %55 }
  0x8e   :  { %v203_v25 = vpop.permute.xlu2 %202  ;;  %vm85_vm10 = vcmp.le.s32.totalorder %v729_v36, %v706_v23  ;;  %vm102_vm12 = vcmp.lt.s32.totalorder %v706_v23, %v732_v37 }
  0x8f   :  { %vm241_vm15 = vcmp.eq.s32.totalorder %v722_v32, %v203_v25  ;;  %vm118_vm1 = vmand %vm85_vm10, %vm102_vm12 }
  0x90   :  { %v496_v58 = vsel %vm241_vm15, 1.0, %v529_v41  ;;  %vm829_vm6 = vmand %vm118_vm1, %vm124_vm4 }
  0x91   :  { %v486_v21 = vsel %vm829_vm6, 1.0, %v529_v41 }
  0x95   :  { %v710_v26 = vpop.permute.xlu1 %67  ;;  %v712_v27 = vpop.permute.xlu0 %64 }
  0x96   :  { %v714_v28 = vpop.permute.xlu2 %208  ;;  %vm88_vm10 = vcmp.le.s32.totalorder %v729_v36, %v710_v26  ;;  %vm105_vm12 = vcmp.lt.s32.totalorder %v710_v26, %v732_v37 }
  0x97   :  { %vm121_vm1 = vmand %vm88_vm10, %vm105_vm12  ;;  %vm81_vm10 = vcmp.le.s32.totalorder %v729_v36, %v702_v22  ;;  %vm98_vm12 = vcmp.lt.s32.totalorder %v702_v22, %v732_v37 }
  0x9d   :  { %v716_v16 = vpop.permute.xlu0 %73 }
  0x9e   :  { %v718_v29 = vpop.permute.xlu2 %217  ;;  %v720_v30 = vpop.permute.xlu1 %190 }
  0x9f   :  { %vm237_vm15 = vcmp.eq.s32.totalorder %v722_v32, %v720_v30  ;;  %v481_v30 = vsel %vm821_vm3, 1.0, %v529_v41 }
  0xa0   :  { %v492_v8 = vsel %vm237_vm15, 1.0, %v529_v41 }
  0xa6   :  { %v724_v33 = vpop.permute.xlu2 %226  ;;  %v197_v34 = vpop.permute.xlu0 %196 }
  0xa7   :  { %v726_v35 = vpop.permute.xlu1 %199  ;;  %vm239_vm9 = vcmp.eq.s32.totalorder %v722_v32, %v197_v34 }
  0xa8   :  { %v494_v49 = vsel %vm239_vm9, 1.0, %v529_v41  ;;  %vm76_vm9 = vcmp.le.s32.totalorder %v729_v36, %v698_v19 }
  0xa9   :  { %vm109_vm2 = vmand %vm76_vm9, %vm93_vm14  ;;  %vm238_vm14 = vcmp.eq.s32.totalorder %v722_v32, %v704_v15 }
  0xaa   :  { %vm843_vm9 = vmand %vm109_vm2, %vm124_vm4 }
  0xab   :  { %v477_v31 = vsel %vm843_vm9, 1.0, %v529_v41  ;;  %vm116_vm2 = vmand %vm83_vm5, %vm100_vm7  ;;  %vm86_vm7 = vcmp.le.s32.totalorder %v729_v36, %v686_v7 }
  0xac   :  { %vm138_vm5 = vmand %vm121_vm1, %vm124_vm4 }
  0xad   :  { %vm897_vm6 = vmand %vm116_vm2, %vm124_vm4 }
  0xae   :  { %v734_v38 = vpop.permute.xlu2 %235  ;;  %v736_v39 = vpop.permute.xlu0 %211  ;;  %vm114_vm1 = vmand %vm81_vm10, %vm98_vm12  ;;  %vm101_vm10 = vcmp.lt.s32.totalorder %v708_v24, %v732_v37 }
  0xaf   :  { %v738_v40 = vpop.permute.xlu1 %205  ;;  %vm244_vm13 = vcmp.eq.s32.totalorder %v722_v32, %v736_v39 }
  0xb0   :  { %v499_v5 = vsel %vm244_vm13, 1.0, %v529_v41  ;;  %vm95_vm13 = vcmp.lt.s32.totalorder %v696_v18, %v732_v37  ;;  %vm242_vm0 = vcmp.eq.s32.totalorder %v722_v32, %v738_v40 }
  0xb1   :  { %vm111_vm3 = vmand %vm78_vm8, %vm95_vm13  ;;  %vm103_vm8 = vcmp.lt.s32.totalorder %v686_v7, %v732_v37 }
  0xb2   :  { %vm911_vm9 = vmand %vm111_vm3, %vm124_vm4 }
  0xb3   :  { %vm131_vm3 = vmand %vm114_vm1, %vm124_vm4  ;;  %vm87_vm1 = vcmp.le.s32.totalorder %v729_v36, %v712_v27 }
  0xb6   :  { %v749_v43 = vpop.permute.xlu0 %220 }
  0xb7   :  { %v751_v44 = vpop.permute.xlu1 %214  ;;  %v340_v45 = vpop.permute.xlu2 %339  ;;  %vm247_vm15 = vcmp.eq.s32.totalorder %v722_v32, %v749_v43  ;;  %v493_v43 = vsel %vm238_vm14, 1.0, %v529_v41  ;;  %vm240_vm14 = vcmp.eq.s32.totalorder %v722_v32, %v726_v35 }
  0xb8   :  { %v409_v46 = vmul.f32 %v745_v42, %v340_v45  ;;  %v502_v34 = vsel %vm247_vm15, 1.0, %v529_v41  ;;  %v497_v45 = vsel %vm242_vm0, 1.0, %v529_v41  ;;  %vm245_vm15 = vcmp.eq.s32.totalorder %v722_v32, %v751_v44  ;;  %vm119_vm0 = vmand %vm86_vm7, %vm103_vm8 }
  0xb9   :  { %vm136_vm2 = vmand %vm119_vm0, %vm124_vm4  ;;  %vm243_vm7 = vcmp.eq.s32.totalorder %v722_v32, %v714_v28 }
  0xba   :  { %v425_v48 = vadd.f32 %v478_v47, %v409_v46 }
  0xbc   :  { %v441_v51 = vadd.f32 %v494_v49, %v425_v48  ;;  %v489_v49 = vsel %vm138_vm5, 1.0, %v529_v41  ;;  %vm89_vm5 = vcmp.le.s32.totalorder %v729_v36, %v694_v17 }
  0xbe   :  { %458 = vst.msk [vmem:[%s1053_s1 + $0x10] sm:$0xff] %vm455_vm11, %v441_v51  ;;  %v767_v50 = vpop.permute.xlu0 %229 }
  0xbf   :  { %v769_v52 = vpop.permute.xlu1 %223  ;;  %v350_v53 = vpop.permute.xlu2 %349  ;;  %vm250_vm13 = vcmp.eq.s32.totalorder %v722_v32, %v767_v50 }
  0xc0   :  { %v411_v54 = vmul.f32 %v745_v42, %v350_v53  ;;  %v505_v35 = vsel %vm250_vm13, 1.0, %v529_v41  ;;  %vm248_vm8 = vcmp.eq.s32.totalorder %v722_v32, %v769_v52 }
  0xc1   :  { %v503_v52 = vsel %vm248_vm8, 1.0, %v529_v41  ;;  %vm107_vm8 = vcmp.lt.s32.totalorder %v716_v16, %v732_v37 }
  0xc2   :  { %v427_v56 = vadd.f32 %v480_v55, %v411_v54 }
  0xc4   :  { %v443_v59 = vadd.f32 %v496_v58, %v427_v56  ;;  %v484_v58 = vsel %vm897_vm6, 1.0, %v529_v41  ;;  %vm106_vm6 = vcmp.lt.s32.totalorder %v694_v17, %v732_v37  ;;  %v487_v17 = vsel %vm136_vm2, 1.0, %v529_v41 }
  0xc5   :  { %vm122_vm12 = vmand %vm89_vm5, %vm106_vm6  ;;  %vm104_vm2 = vcmp.lt.s32.totalorder %v712_v27, %v732_v37 }
  0xc6   :  { %460 = vst.msk [vmem:[%s1053_s1 + $0x20] sm:$0xff] %vm455_vm11, %v443_v59  ;;  %v479_v59 = vsel %vm911_vm9, 1.0, %v529_v41  ;;  %vm84_vm9 = vcmp.le.s32.totalorder %v729_v36, %v708_v24  ;;  %vm120_vm5 = vmand %vm87_vm1, %vm104_vm2 }
  0xc7   :  { %v795_v60 = vpop.permute.xlu1 %232  ;;  %v365_v61 = vpop.permute.xlu2 %364  ;;  %vm117_vm13 = vmand %vm84_vm9, %vm101_vm10  ;;  %vm249_vm9 = vcmp.eq.s32.totalorder %v722_v32, %v724_v33 }
  0xc8   :  { %v414_v62 = vmul.f32 %v745_v42, %v365_v61  ;;  %v330_v63 = vpop.permute.xlu0 %329  ;;  %vm251_vm0 = vcmp.eq.s32.totalorder %v722_v32, %v795_v60  ;;  %vm137_vm6 = vmand %vm120_vm5, %vm124_vm4 }
  0xc9   :  { %v407_v2 = vmul.f32 %v745_v42, %v330_v63  ;;  %v500_v63 = vsel %vm245_vm15, 1.0, %v529_v41  ;;  %vm134_vm15 = vmand %vm117_vm13, %vm124_vm4  ;;  %v506_v60 = vsel %vm251_vm0, 1.0, %v529_v41  ;;  %vm252_vm13 = vcmp.eq.s32.totalorder %v722_v32, %v734_v38 }
  0xca   :  { %v430_v3 = vadd.f32 %v483_v1, %v414_v62  ;;  %v495_v62 = vsel %vm240_vm14, 1.0, %v529_v41  ;;  %vm139_vm14 = vmand %vm122_vm12, %vm124_vm4 }
  0xcb   :  { %v423_v6 = vadd.f32 %v476_v4, %v407_v2  ;;  %v490_v11 = vsel %vm139_vm14, 1.0, %v529_v41 }
  0xcc   :  { %v446_v9 = vadd.f32 %v499_v5, %v430_v3 }
  0xcd   :  { %v439_v57 = vadd.f32 %v492_v8, %v423_v6  ;;  %v482_v6 = vsel %vm131_vm3, 1.0, %v529_v41  ;;  %vm246_vm3 = vcmp.eq.s32.totalorder %v722_v32, %v718_v29 }
  0xce   :  { %463 = vst.msk [vmem:[%s1053_s1 + $0x38] sm:$0xff] %vm455_vm11, %v446_v9  ;;  %v498_v9 = vsel %vm243_vm7, 1.0, %v529_v41  ;;  %vm90_vm7 = vcmp.le.s32.totalorder %v729_v36, %v716_v16 }
  0xcf   :  { %456 = vst.msk [vmem:[%s1053_s1] sm:$0xff] %vm455_vm11, %v439_v57  ;;  %v380_v13 = vpop.permute.xlu2 %379  ;;  %vm123_vm10 = vmand %vm90_vm7, %vm107_vm8 }
  0xd0   :  { %v417_v19 = vmul.f32 %v745_v42, %v380_v13  ;;  %v355_v14 = vpop.permute.xlu0 %354  ;;  %v335_v20 = vpop.permute.xlu1 %334  ;;  %vm140_vm12 = vmand %vm123_vm10, %vm124_vm4 }
  0xd1   :  { %v412_v23 = vmul.f32 %v745_v42, %v355_v14  ;;  %v408_v25 = vmul.f32 %v745_v42, %v335_v20  ;;  %v485_v20 = vsel %vm134_vm15, 1.0, %v529_v41  ;;  %v491_v36 = vsel %vm140_vm12, 1.0, %v529_v41 }
  0xd2   :  { %v433_v26 = vadd.f32 %v486_v21, %v417_v19 }
  0xd3   :  { %v428_v39 = vadd.f32 %v481_v30, %v412_v23  ;;  %v424_v40 = vadd.f32 %v477_v31, %v408_v25  ;;  %v501_v23 = vsel %vm246_vm3, 1.0, %v529_v41  ;;  %v488_v30 = vsel %vm137_vm6, 1.0, %v529_v41 }
  0xd4   :  { %v449_v0 = vadd.f32 %v502_v34, %v433_v26  ;;  %v504_v34 = vsel %vm249_vm9, 1.0, %v529_v41 }
  0xd5   :  { %v444_v46 = vadd.f32 %v497_v45, %v428_v39  ;;  %v440_v47 = vadd.f32 %v493_v43, %v424_v40  ;;  %v507_v40 = vsel %vm252_vm13, 1.0, %v529_v41 }
  0xd6   :  { %466 = vst.msk [vmem:[%s1053_s1 + $0x50] sm:$0xff] %vm455_vm11, %v449_v0 }
  0xd7   :  { %461 = vst.msk [vmem:[%s1053_s1 + $0x28] sm:$0xff] %vm455_vm11, %v444_v46  ;;  %v395_v15 = vpop.permute.xlu2 %394 }
  0xd8   :  { %457 = vst.msk [vmem:[%s1053_s1 + $0x8] sm:$0xff] %vm455_vm11, %v440_v47  ;;  %v420_v51 = vmul.f32 %v745_v42, %v395_v15  ;;  %v370_v53 = vpop.permute.xlu0 %369  ;;  %v345_v54 = vpop.permute.xlu1 %344 }
  0xd9   :  { %v415_v55 = vmul.f32 %v745_v42, %v370_v53  ;;  %v410_v50 = vmul.f32 %v745_v42, %v345_v54 }
  0xda   :  { %v436_v56 = vadd.f32 %v489_v49, %v420_v51 }
  0xdb   :  { %v431_v44 = vadd.f32 %v484_v58, %v415_v55  ;;  %v426_v61 = vadd.f32 %v479_v59, %v410_v50 }
  0xdc   :  { %v452_v1 = vadd.f32 %v505_v35, %v436_v56 }
  0xdd   :  { %v447_v2 = vadd.f32 %v500_v63, %v431_v44  ;;  %v442_v3 = vadd.f32 %v495_v62, %v426_v61 }
  0xde   :  { %469 = vst.msk [vmem:[%s1053_s1 + $0x68] sm:$0xff] %vm455_vm11, %v452_v1 }
  0xdf   :  { %464 = vst.msk [vmem:[%s1053_s1 + $0x40] sm:$0xff] %vm455_vm11, %v447_v2 }
  0xe0   :  { %459 = vst.msk [vmem:[%s1053_s1 + $0x18] sm:$0xff] %vm455_vm11, %v442_v3  ;;  %v385_v7 = vpop.permute.xlu0 %384  ;;  %v360_v22 = vpop.permute.xlu1 %359 }
  0xe1   :  { %v418_v4 = vmul.f32 %v745_v42, %v385_v7  ;;  %v413_v5 = vmul.f32 %v745_v42, %v360_v22 }
  0xe3   :  { %v434_v8 = vadd.f32 %v487_v17, %v418_v4  ;;  %v429_v28 = vadd.f32 %v482_v6, %v413_v5 }
  0xe5   :  { %v450_v10 = vadd.f32 %v503_v52, %v434_v8  ;;  %v445_v57 = vadd.f32 %v498_v9, %v429_v28 }
  0xe7   :  { %467 = vst.msk [vmem:[%s1053_s1 + $0x58] sm:$0xff] %vm455_vm11, %v450_v10 }
  0xe8   :  { %462 = vst.msk [vmem:[%s1053_s1 + $0x30] sm:$0xff] %vm455_vm11, %v445_v57  ;;  %v400_v24 = vpop.permute.xlu0 %399  ;;  %v375_v13 = vpop.permute.xlu1 %374 }
  0xe9   :  { %v421_v12 = vmul.f32 %v745_v42, %v400_v24  ;;  %v416_v19 = vmul.f32 %v745_v42, %v375_v13 }
  0xeb   :  { %v437_v14 = vadd.f32 %v490_v11, %v421_v12  ;;  %v432_v21 = vadd.f32 %v485_v20, %v416_v19 }
  0xed   :  { %v453_v25 = vadd.f32 %v506_v60, %v437_v14  ;;  %v448_v26 = vadd.f32 %v501_v23, %v432_v21 }
  0xef   :  { %470 = vst.msk [vmem:[%s1053_s1 + $0x70] sm:$0xff] %vm455_vm11, %v453_v25 }
  0xf0   :  { %465 = vst.msk [vmem:[%s1053_s1 + $0x48] sm:$0xff] %vm455_vm11, %v448_v26  ;;  %v390_v27 = vpop.permute.xlu1 %389 }
  0xf1   :  { %v419_v29 = vmul.f32 %v745_v42, %v390_v27 }
  0xf3   :  { %v435_v31 = vadd.f32 %v488_v30, %v419_v29 }
  0xf5   :  { %v451_v39 = vadd.f32 %v504_v34, %v435_v31 }
  0xf7   :  { %468 = vst.msk [vmem:[%s1053_s1 + $0x60] sm:$0xff] %vm455_vm11, %v451_v39 }
  0xf8   :  { %v405_v16 = vpop.permute.xlu1 %404 }
  0xf9   :  { %v422_v33 = vmul.f32 %v745_v42, %v405_v16 }
  0xfb   :  { %v438_v37 = vadd.f32 %v491_v36, %v422_v33 }
  0xfd   :  { %v454_v43 = vadd.f32 %v507_v40, %v438_v37 }
  0xff   :  { %471 = vst.msk [vmem:[%s1053_s1 + $0x78] sm:$0xff] %vm455_vm11, %v454_v43 }

</bundles_post_ra>
